<compile_context>
chip_gen: v5e
topology: v5e:2x2
jax: 0.10.0
libtpu: 0.0.40
codegen_flags: <defaults>
</compile_context>

<pallas_src>
from collections import OrderedDict

import jax
import jax.numpy as jnp
from jax.experimental import pallas as pl
from jax.experimental.pallas import tpu as pltpu


def _round_up(x, m):
    return pl.cdiv(x, m) * m


def _make_heads_kernel(num_heads):
    """x tile -> per-head (K_i, C) @ (C, t) + b_i, written to per-head outputs."""

    def kernel(*refs):
        x_ref = refs[0]                                    # (1, C, t)
        w_refs = refs[1:1 + num_heads]                     # (K_i, C) each
        b_refs = refs[1 + num_heads:1 + 2 * num_heads]     # (K_i, 1) each
        o_refs = refs[1 + 2 * num_heads:]                  # (1, K_i, t) each
        x = x_ref[0]                                       # (C, t)
        for w_ref, b_ref, o_ref in zip(w_refs, b_refs, o_refs):
            acc = jnp.dot(w_ref[...], x, preferred_element_type=jnp.float32)
            o_ref[0] = (acc + b_ref[...]).astype(o_ref.dtype)

    return kernel


def _choose_spatial_tile(C, k_sizes, HW, t_hw, x_itemsize, out_itemsize):
    """Largest lane-aligned spatial tile keeping double-buffered VMEM < ~44 MiB."""
    c_sub = _round_up(C, 8)
    k_pad = sum(_round_up(k, 8) for k in k_sizes)
    # Resident per-head weights / biases (double-buffered by default pipelining).
    const_bytes = 2 * (k_pad * _round_up(C, 128) * 4 + k_pad * 128 * 4)
    # Per spatial column: double-buffered x tile + double-buffered out tiles.
    per_col = 2 * c_sub * x_itemsize + 2 * k_pad * out_itemsize
    budget = 44 << 20                      # headroom under v7x's 64 MiB VMEM / TC
    t_cap = max((budget - const_bytes) // per_col, 128)
    t_cap = max((t_cap // 128) * 128, 128)
    if HW <= t_hw and HW <= t_cap:
        t = HW                             # single tile; full-dim block is always legal
    else:
        t = max(min((t_hw // 128) * 128, t_cap), 128)
    vmem_est = const_bytes + per_col * _round_up(t, 128)
    return t, vmem_est


def light_class_head_conv(x_nchw, w_list, b_list, *, t_hw=8192):
    """Fused multi-head 1x1 conv.

    x_nchw: (N, C, H, W); w_list[i]: (K_i, C); b_list[i]: (K_i,)
    Returns a list of (N, K_i, H, W), one per head, from a single kernel.
    """
    N, C, H, W = x_nchw.shape
    HW = H * W
    num_heads = len(w_list)
    k_sizes = [int(w.shape[0]) for w in w_list]
    k_total = sum(k_sizes)

    x = x_nchw.reshape(N, C, HW)              # contiguous reshape: free
    b2d = [b.reshape(-1, 1) for b in b_list]

    itemsize = jnp.dtype(x.dtype).itemsize
    t, vmem_est = _choose_spatial_tile(C, k_sizes, HW, t_hw, itemsize, itemsize)

    # Spatial tiles lead the grid so v7x megacore splits them across both TCs.
    grid = (pl.cdiv(HW, t), N)

    in_specs = [pl.BlockSpec((1, C, t), lambda j, n: (n, 0, j))]
    # Resident weights / biases: constant index_map -> never re-fetched.
    # TODO(synk): pipeline_mode=pl.Buffered(1) on these would drop their second
    # VMEM buffer (minor saving, only matters when pushing the v7x 64 MiB limit).
    in_specs += [pl.BlockSpec((k, C), lambda j, n: (0, 0)) for k in k_sizes]
    in_specs += [pl.BlockSpec((k, 1), lambda j, n: (0, 0)) for k in k_sizes]

    out_specs = [pl.BlockSpec((1, k, t), lambda j, n: (n, 0, j)) for k in k_sizes]
    out_shape = tuple(jax.ShapeDtypeStruct((N, k, HW), x.dtype) for k in k_sizes)

    cost = pl.CostEstimate(
        flops=2 * N * HW * C * k_total,
        transcendentals=0,
        bytes_accessed=itemsize * (N * C * HW + k_total * C + k_total
                                   + N * k_total * HW),
    )

    outs = pl.pallas_call(
        _make_heads_kernel(num_heads),
        out_shape=out_shape,
        grid_spec=pltpu.PrefetchScalarGridSpec(
            num_scalar_prefetch=0,
            grid=grid,
            in_specs=in_specs,
            out_specs=out_specs,
        ),
        compiler_params=pltpu.CompilerParams(
            dimension_semantics=("parallel", "parallel"),
            vmem_limit_bytes=int(min(max(vmem_est + (4 << 20), 32 << 20), 48 << 20)),
        ),
        cost_estimate=cost,
    )(x, *w_list, *b2d)

    return [o.reshape(N, k, H, W) for o, k in zip(outs, k_sizes)]


def init_light_class_head_params(key, decoder_channels, num_classes, class_key):
    """Deterministic synthetic init of one (weight, bias) pair per head.

    PyTorch weight shape is (K, C, 1, 1); we store the equivalent (K, C)
    matrix used directly by the fused NCHW kernel.
    """
    params = OrderedDict()
    for i, name in enumerate(class_key):
        k_w, k_b, key = jax.random.split(jax.random.fold_in(key, i), 3)
        K = num_classes[i]
        w = jax.random.normal(k_w, (K, decoder_channels), dtype=jnp.float32) * 0.02
        b = jax.random.normal(k_b, (K,), dtype=jnp.float32) * 0.02
        params[name] = (w, b)
    return params


def light_class_head_forward(x_nchw, params, class_key):
    """Forward pass equivalent to LightClassHead.forward (NCHW in, NCHW out)."""
    w_list = [params[name][0] for name in class_key]
    b_list = [params[name][1] for name in class_key]
    outs = light_class_head_conv(x_nchw, w_list, b_list)
    return OrderedDict(zip(class_key, outs))


if __name__ == "__main__":
    # Small, module-consistent shapes.
    N, C, H, W = 2, 4, 16, 16
    decoder_channels = C
    num_classes = (19, 2)                 # e.g. semantic classes, instance classes
    class_key = ("semantic", "instance")

    key = jax.random.PRNGKey(0)
    k_x, k_p = jax.random.split(key)
    x = jax.random.normal(k_x, (N, C, H, W), dtype=jnp.float32)
    params = init_light_class_head_params(k_p, decoder_channels, num_classes, class_key)

    pred = light_class_head_forward(x, params, class_key)
    for name in class_key:
        jax.block_until_ready(pred[name])

    # Sanity check vs plain-JAX reference (1x1 conv == per-pixel matmul).
    ok = True
    for i, name in enumerate(class_key):
        w, b = params[name]               # (K_i, C), (K_i,)
        ref = jnp.einsum("nchw,kc->nkhw", x, w) + b[None, :, None, None]
        ok = ok and bool(jnp.allclose(pred[name], ref, atol=1e-5, rtol=1e-5))
        ok = ok and pred[name].shape == (N, num_classes[i], H, W)

    if ok:
        print("KERNEL_OK")
</pallas_src>

<mosaic_0001>
module attributes {stable_mosaic.version = 11 : i64} {
  func.func @kernel(%arg0: i32, %arg1: i32, %arg2: memref<1x4x256xf32, #tpu.memory_space<vmem>>, %arg3: memref<19x4xf32, #tpu.memory_space<vmem>>, %arg4: memref<2x4xf32, #tpu.memory_space<vmem>>, %arg5: memref<19x1xf32, #tpu.memory_space<vmem>>, %arg6: memref<2x1xf32, #tpu.memory_space<vmem>>, %arg7: memref<1x19x256xf32, #tpu.memory_space<vmem>>, %arg8: memref<1x2x256xf32, #tpu.memory_space<vmem>>) attributes {dimension_semantics = [#tpu.dimension_semantics<parallel>, #tpu.dimension_semantics<parallel>], iteration_bounds = array<i64: 1, 2>, scalar_prefetch = 0 : i64, scratch_operands = 0 : i64, tpu.core_type = #tpu.core_type<tc>, window_params = [{transform_indices = @transform_0, window_bounds = array<i64: 1, 4, 256>}, {pipeline_mode = #tpu.pipeline_mode<synchronous>, transform_indices = @transform_1, window_bounds = array<i64: 19, 4>}, {pipeline_mode = #tpu.pipeline_mode<synchronous>, transform_indices = @transform_2, window_bounds = array<i64: 2, 4>}, {pipeline_mode = #tpu.pipeline_mode<synchronous>, transform_indices = @transform_3, window_bounds = array<i64: 19, 1>}, {pipeline_mode = #tpu.pipeline_mode<synchronous>, transform_indices = @transform_4, window_bounds = array<i64: 2, 1>}, {transform_indices = @transform_5, window_bounds = array<i64: 1, 19, 256>}, {transform_indices = @transform_6, window_bounds = array<i64: 1, 2, 256>}]} {
    %c0 = arith.constant 0 : index
    %c0_0 = arith.constant 0 : index
    %c0_1 = arith.constant 0 : index
    %0 = vector.load %arg2[%c0, %c0_0, %c0_1] : memref<1x4x256xf32, #tpu.memory_space<vmem>>, vector<1x4x256xf32>
    %1 = vector.shape_cast %0 : vector<1x4x256xf32> to vector<4x256xf32>
    %c0_2 = arith.constant 0 : index
    %c0_3 = arith.constant 0 : index
    %2 = vector.load %arg3[%c0_2, %c0_3] : memref<19x4xf32, #tpu.memory_space<vmem>>, vector<19x4xf32>
    %cst = arith.constant dense<0.000000e+00> : vector<19x256xf32>
    %3 = tpu.matmul %2, %1, %cst {dimension_numbers = #tpu.dot_dimension_numbers<[1], [0], [0], [1], [0, 0, 1, 1], [], []>} : vector<19x4xf32>, vector<4x256xf32>, vector<19x256xf32> -> vector<19x256xf32>
    %c0_4 = arith.constant 0 : index
    %c0_5 = arith.constant 0 : index
    %4 = vector.load %arg5[%c0_4, %c0_5] : memref<19x1xf32, #tpu.memory_space<vmem>>, vector<19x1xf32>
    %5 = vector.broadcast %4 : vector<19x1xf32> to vector<19x256xf32>
    %6 = arith.addf %3, %5 : vector<19x256xf32>
    %c0_6 = arith.constant 0 : index
    %c0_7 = arith.constant 0 : index
    %c0_8 = arith.constant 0 : index
    %7 = vector.load %arg7[%c0_6, %c0_7, %c0_8] : memref<1x19x256xf32, #tpu.memory_space<vmem>>, vector<1x19x256xf32>
    %8 = vector.shape_cast %7 : vector<1x19x256xf32> to vector<19x256xf32>
    %9 = vector.shape_cast %6 : vector<19x256xf32> to vector<1x19x256xf32>
    tpu.vector_store %arg7[%c0_6, %c0_7, %c0_8], %9 {strides = array<i32>} : memref<1x19x256xf32, #tpu.memory_space<vmem>>, vector<1x19x256xf32>,
    %c0_9 = arith.constant 0 : index
    %c0_10 = arith.constant 0 : index
    %10 = vector.load %arg4[%c0_9, %c0_10] : memref<2x4xf32, #tpu.memory_space<vmem>>, vector<2x4xf32>
    %cst_11 = arith.constant dense<0.000000e+00> : vector<2x256xf32>
    %11 = tpu.matmul %10, %1, %cst_11 {dimension_numbers = #tpu.dot_dimension_numbers<[1], [0], [0], [1], [0, 0, 1, 1], [], []>} : vector<2x4xf32>, vector<4x256xf32>, vector<2x256xf32> -> vector<2x256xf32>
    %c0_12 = arith.constant 0 : index
    %c0_13 = arith.constant 0 : index
    %12 = vector.load %arg6[%c0_12, %c0_13] : memref<2x1xf32, #tpu.memory_space<vmem>>, vector<2x1xf32>
    %13 = vector.broadcast %12 : vector<2x1xf32> to vector<2x256xf32>
    %14 = arith.addf %11, %13 : vector<2x256xf32>
    %c0_14 = arith.constant 0 : index
    %c0_15 = arith.constant 0 : index
    %c0_16 = arith.constant 0 : index
    %15 = vector.load %arg8[%c0_14, %c0_15, %c0_16] : memref<1x2x256xf32, #tpu.memory_space<vmem>>, vector<1x2x256xf32>
    %16 = vector.shape_cast %15 : vector<1x2x256xf32> to vector<2x256xf32>
    %17 = vector.shape_cast %14 : vector<2x256xf32> to vector<1x2x256xf32>
    tpu.vector_store %arg8[%c0_14, %c0_15, %c0_16], %17 {strides = array<i32>} : memref<1x2x256xf32, #tpu.memory_space<vmem>>, vector<1x2x256xf32>,
    return
  }
  func.func @transform_0(%arg0: i32, %arg1: i32) -> (i32, i32, i32) {
    %c0_i32 = arith.constant 0 : i32
    %c0_i32_0 = arith.constant 0 : i32
    return %arg1, %c0_i32, %arg0 : i32, i32, i32
  }
  func.func @transform_1(%arg0: i32, %arg1: i32) -> (i32, i32) {
    %c0_i32 = arith.constant 0 : i32
    %c0_i32_0 = arith.constant 0 : i32
    %c0_i32_1 = arith.constant 0 : i32
    return %c0_i32, %c0_i32_0 : i32, i32
  }
  func.func @transform_2(%arg0: i32, %arg1: i32) -> (i32, i32) {
    %c0_i32 = arith.constant 0 : i32
    %c0_i32_0 = arith.constant 0 : i32
    %c0_i32_1 = arith.constant 0 : i32
    return %c0_i32, %c0_i32_0 : i32, i32
  }
  func.func @transform_3(%arg0: i32, %arg1: i32) -> (i32, i32) {
    %c0_i32 = arith.constant 0 : i32
    %c0_i32_0 = arith.constant 0 : i32
    %c0_i32_1 = arith.constant 0 : i32
    return %c0_i32, %c0_i32_0 : i32, i32
  }
  func.func @transform_4(%arg0: i32, %arg1: i32) -> (i32, i32) {
    %c0_i32 = arith.constant 0 : i32
    %c0_i32_0 = arith.constant 0 : i32
    %c0_i32_1 = arith.constant 0 : i32
    return %c0_i32, %c0_i32_0 : i32, i32
  }
  func.func @transform_5(%arg0: i32, %arg1: i32) -> (i32, i32, i32) {
    %c0_i32 = arith.constant 0 : i32
    %c0_i32_0 = arith.constant 0 : i32
    return %arg1, %c0_i32, %arg0 : i32, i32, i32
  }
  func.func @transform_6(%arg0: i32, %arg1: i32) -> (i32, i32, i32) {
    %c0_i32 = arith.constant 0 : i32
    %c0_i32_0 = arith.constant 0 : i32
    return %arg1, %c0_i32, %arg0 : i32, i32, i32
  }
}

</mosaic_0001>

<bundles_post_ra>
// kernel: tpu_custom_call.1
= control target key start
LH: loop header
LB: loop body
LE: loop exit
PB: predicated region body
PF: predicated region fallthrough
CT: control target
= control target key end

     0   :  { %12 = vsyncpa [#allocation3], 0  ;;  %s960_s0 = inlined_call_operand.vmem [shape: f32[2,4,256], index: 0, kind: input, shape index: {}]   ;;  %s961_s1 = inlined_call_operand.vmem [shape: f32[19,4], index: 1, kind: input, shape index: {}]   ;;  %s962_s2 = inlined_call_operand.vmem [shape: f32[2,4], index: 2, kind: input, shape index: {}]   ;;  %s963_s3 = inlined_call_operand.vmem [shape: f32[19,1], index: 3, kind: input, shape index: {}]   ;;  %s964_s4 = inlined_call_operand.vmem [shape: f32[2,1], index: 4, kind: input, shape index: {}]   ;;  %s965_s5 = inlined_call_operand.vmem [shape: f32[2,19,256], index: 5, kind: output, shape index: {0}]   ;;  %s966_s6 = inlined_call_operand.hbm [shape: f32[2,2,256], index: 6, kind: output, shape index: {1}]  }
   0x1   :  { %14 = vsyncpa [#allocation3 + $0x1], 0  ;;  %s818_s21 = smov 0   ;;  %s820_s22 = smov 0  }
   0x2   :  { %s822_s23 = smov 0   ;;  %s824_s24 = smov 0  }
   0x3   :  { %s826_s25 = smov 0   ;;  %s828_s26 = smov 0  }
   0x4 LB: > { %s613_s27 = sadd.s32 4294967295, %s780_s26   ;;  %s614_s28 = sadd.s32 4294967294, %s780_s26   ;;  %s780_s26 = sphi %s828_s26, %s20_s26   ;;  %s776_s25 = sphi %s826_s25, %s973_s25   ;;  %s772_s24 = sphi %s824_s24, %s972_s24   ;;  %s768_s23 = sphi %s822_s23, %s971_s23   ;;  %s764_s22 = sphi %s820_s22, %s970_s22   ;;  %s760_s21 = sphi %s818_s21, %s969_s21  }
   0x5   : > { %s29_s29 = sadd.s32 1, %s776_s25  ;;  %s181_s30 = sadd.s32 1, %s768_s23 }
   0x6   : > { %p30_p0 = scmp.ge.s32.totalorder %s29_s29, 2  ;;  %p191_p1 = scmp.ne.s32.totalorder %s768_s23, %s764_s22 }
   0x7   : > { %p192_p2 = scmp.eq.s32.totalorder %s613_s27, 1  ;;  %p197_p3 = scmp.ne.s32.totalorder %s764_s22, %s760_s21 }
   0x8   : > { %s975_s29 = smov (%p30_p0, %s29_s29), 0  ;;  %p198_p5 = scmp.eq.s32.totalorder %s614_s28, 1 }
   0x9   : > { %p858_p4 = por %p192_p2, %p191_p1  ;;  %s176_s8 = ssub.s32 %s776_s25, %s975_s29 }
   0xa   : > { %p617_p6 = scmp.ge.s32.totalorder %s780_s26, 1  ;;  %p179_p7 = scmp.eq.s32.totalorder %s176_s8, 0 }
   0xb   : > { %p865_p8 = por %p198_p5, %p197_p3  ;;  %p241_p9 = scmp.lt.s32.totalorder %s780_s26, 3 }
   0xc   : > { %s871_s10 = scalar_select %p179_p7, %s768_s23, %s181_s30  }
   0xd   : > { %p242_p10 = pnand %p617_p6, %p241_p9 }
   0xe   : > { %p285_p11 = scmp.lt.s32.totalorder (!%p242_p10), %s772_s24, 1  ;;  %s281_s30 = sand.u32 (!%p242_p10), 1, %s764_s22  }
   0xf   : > { %245 = sbr.rel (%p242_p10) target bundleno = 182 (0xb6), region = 40  ;;  %s640_s8 = sshll.u32 (!%p242_p10), %s772_s24, 2 }
  0x10   : > { %s495_s14 = scalar_lea.hbm (!%p242_p10), %s966_s6, %s640_s8 }
  0x11   : > { %s499_s17 = sshll.u32 (!%p242_p10), %s495_s14, 4  ;;  %s500_s17 = int_to_ptr.hbm [resolvable:$true] %s499_s17 }
  0x12   : > { %s716_s18 = sshra.s32 (!%p242_p10), %s500_s17, 4  ;;  %s717_s18 = int_to_ptr.hbm [resolvable:$true] %s716_s18 }
  0x13   : > { %p723_p1 = scmp.lt.s32.totalorder (!%p242_p10), %s717_s18, %s966_s6 }
  0x14   : > { %v310_v0 = vld [vmem:[%s963_s3 + $0x8] sm:$0xff]  ;;  %s878_s13 = scalar_select %p285_p11, %s772_s24, 1  ;;  %v782_v1 = vmov 0   ;;  %v405_v2 = vld [vmem:[%s964_s4] sm:$0x3]  ;;  %vm341_vm0 = vcmask 1043456  }
  0x15   : > { %701 = vset.pattern.permute.xlu1 %v782_v1  ;;  %700 = vset.pattern.permute.xlu0 %v782_v1  ;;  %v311_v4 = vld [vmem:[%s963_s3 + $0x10] sm:$0x7]  ;;  %v309_v5 = vld [vmem:[%s963_s3] sm:$0xff]  ;;  %vm331_vm1 = vcmask 31744   ;;  %v307_v13 = vld [vmem:[%s961_s1 + $0x8] sm:$0xff]  ;;  %vm464_vm2 = vcmask 1041408  }
  0x16   : > { %319 = vperm.xlu1 %701, %v310_v0   ;;  %408 = vperm.xlu0 %700, %v405_v2   ;;  %s639_s16 = sshll.u32 %s878_s13, 3  ;;  %v308_v6 = vld [vmem:[%s961_s1 + $0x10] sm:$0x7]  ;;  %v306_v9 = vld [vmem:[%s961_s1] sm:$0xff]  ;;  %s478_s24 = scalar_lea.sflag [#allocation3], %s281_s30 }
  0x17   : > { %s292_s19 = scalar_lea.vmem %s960_s0, %s639_s16  ;;  %v404_v10 = vld [vmem:[%s962_s2] sm:$0x3] }
  0x18   : > { %v305_v3 = vld [vmem:[%s292_s19] sm:$0xff]  ;;  %s643_s19 = smul.u32 48, %s878_s13  ;;  %s618_s13 = sshll.u32 %s281_s30, 2 }
  0x19   : > { %328 = vst [vmem:[#allocation1] ss:$2 sm:$0xff] %v305_v3  ;;  %s283_s15 = scalar_lea.vmem [#allocation2], %s618_s13 }
  0x1a   : > { %s302_s28 = scalar_lea.vmem %s965_s5, %s643_s19  ;;  %s497_s16 = sshll.u32 %s283_s15, 4  ;;  %s498_s16 = int_to_ptr.vmem [resolvable:$true] %s497_s16 }
  0x1b   : > { %s718_s19 = scalar_lea.hbm %s717_s18, 4 }
  0x1c   : > { %p719_p12 = scmp.ne.s32.totalorder %s717_s18, %s718_s19 }
  0x1e   : > { %324 = vperm.xlu1 %701, %v311_v4   ;;  %314 = vperm.xlu0 %700, %v309_v5   ;;  %p720_p13 = pnand %p719_p12, %p858_p4 }
  0x20   : > { %v330_v7 = vld.sshfl [vmem:[#allocation1 + $0x8] sm:$0xff pattern:$0x75316420]  ;;  %v329_v8 = vld.sshfl [vmem:[#allocation1] sm:$0xff pattern:$0x75316420]  ;;  %p721_p0 = pneg %p720_p13 }
  0x21   : > { %642 = vmatpush.msk.msra.mxu3 %vm341_vm0, %v330_v7  ;;  %641 = vmatpush.msk.msra.mxu2 %vm341_vm0, %v329_v8  ;;  %411 = vst [vmem:[#allocation1] ss:$2 sm:$0xff] %v305_v3 }
  0x22   : > { %629 = vmatmul.msk.f32.vlgmr.msra.gmra.mxu3 %vm331_vm1, %v308_v6  ;;  %625 = vmatmul.msk.f32.vlgmr.msra.gmra.mxu2 %vm331_vm1, %v308_v6 }
  0x23   : > { %622 = vmatpush.msk.msra.mxu0 %vm341_vm0, %v329_v8  ;;  %626 = vmatpush.msk.msra.mxu1 %vm341_vm0, %v330_v7 }
  0x24   : > { %623 = vmatmul.msk.f32.vlgmr.msra.gmra.mxu0 %vm331_vm1, %v306_v9  ;;  %627 = vmatmul.msk.f32.vlgmr.msra.gmra.mxu1 %vm331_vm1, %v306_v9 }
  0x28   : > { %v413_v11 = vld.sshfl [vmem:[#allocation1 + $0x8] sm:$0xff pattern:$0x75316420]  ;;  %v412_v12 = vld.sshfl [vmem:[#allocation1] sm:$0xff pattern:$0x75316420] }
  0x29   : > { %632 = vmatpush.msk.msrb.mxu3 %vm341_vm0, %v413_v11  ;;  %630 = vmatpush.msk.msrb.mxu2 %vm341_vm0, %v412_v12 }
  0x2a   : > { %633 = vmatmul.msk.f32.vlgmr.msrb.gmra.mxu3 %vm331_vm1, %v404_v10  ;;  %631 = vmatmul.msk.f32.vlgmr.msrb.gmra.mxu2 %vm331_vm1, %v404_v10 }
  0x2c   : > { %624 = vmatmul.msk.f32.gmra.mxu0 %vm331_vm1, %v307_v13  ;;  %628 = vmatmul.msk.f32.gmra.mxu1 %vm331_vm1, %v307_v13 }
  0x88   : > { %v409_v14 = vpop.permute.xlu0 %408  ;;  %v320_v15 = vpop.permute.xlu1 %319 }
  0x90   : > { %v315_v16 = vpop.permute.xlu0 %314  ;;  %v325_v21 = vpop.permute.xlu1 %324 }
  0xa1   : > { %v363_v17 = vpop.f32.mrf.mxu0  ;;  %v389_v18 = vpop.f32.mrf.mxu1 }
  0xa2   : > { %v364_v19 = vadd.f32 %v363_v17, %v315_v16  ;;  %v390_v20 = vadd.f32 %v389_v18, %v315_v16 }
  0xa4   : > { %398 = vst [vmem:[%s302_s28] sm:$0xff] %v364_v19 }
  0xa5   : > { %v395_v22 = vpop.f32.mrf.mxu3  ;;  %v369_v23 = vpop.f32.mrf.mxu2  ;;  %399 = vst [vmem:[%s302_s28 + $0x8] sm:$0xff] %v390_v20 }
  0xa6   : > { %v370_v24 = vadd.f32 %v369_v23, %v325_v21  ;;  %v396_v25 = vadd.f32 %v395_v22, %v325_v21 }
  0xa8   : > { %402 = vst [vmem:[%s302_s28 + $0x20] sm:$0x7] %v370_v24 }
  0xa9   : > { %403 = vst [vmem:[%s302_s28 + $0x28] sm:$0x7] %v396_v25  ;;  %v366_v26 = vpop.f32.mrf.mxu0  ;;  %v392_v27 = vpop.f32.mrf.mxu1 }
  0xaa   : > { %v367_v28 = vadd.f32 %v366_v26, %v320_v15  ;;  %v393_v29 = vadd.f32 %v392_v27, %v320_v15 }
  0xac   : > { %400 = vst [vmem:[%s302_s28 + $0x10] sm:$0xff] %v367_v28 }
  0xad   : > { %v458_v30 = vpop.f32.mrf.mxu3  ;;  %401 = vst [vmem:[%s302_s28 + $0x18] sm:$0xff] %v393_v29  ;;  %v438_v31 = vpop.f32.mrf.mxu2  ;;  %s722_s28 = scalar_lea.hbm %s966_s6, 8 }
  0xae   : > { %v459_v32 = vadd.f32 %v458_v30, %v409_v14  ;;  %v439_v34 = vadd.f32 %v438_v31, %v409_v14  ;;  %p724_p2 = scmp.lt.s32.totalorder %s722_s28, %s718_s19 }
  0xb0   : > { %v463_v33 = vrot.slane %v459_v32, 6  ;;  %p725_p3 = por %p724_p2, %p723_p1 }
  0xb2   : > { %v465_v35 = vsel %vm464_vm2, %v439_v34, %v463_v33  ;;  %p726_p5 = pnand %p725_p3, %p721_p0 }
  0xb3   : > { %467 = vst [vmem:[%s283_s15] sm:$0xf] %v465_v35 }
  0xb4   : > { %729 = shalt.err (!%p726_p5)
}
  0xb5   : > { %644 = dma.vmem_to_hbm [thread:$0]  (%p858_p4), %s498_s16, 64, %s500_s17, %s478_s24  }
  0xb6 PF: > { %p650_p6 = scmp.ge.s32.totalorder %s780_s26, 2  ;;  %s523_s30 = sand.u32 1, %s760_s21  }
  0xb7   : > { %s524_s11 = scalar_lea.sflag [#allocation3], %s523_s30 }
  0xb8   : > { %p647_p7 = pnand %p650_p6, %p865_p8 }
  0xba   : > { %p648_p9 = pneg %p647_p7 }
  0xbc   : > { %755 = dma.done.wait (%p648_p9), %s524_s11, 64  }
  0xbd   : > { %757 = vsyncadd (%p648_p9), %s524_s11, 4294967232  ;;  %s20_s26 = sadd.s32 1, %s780_s26   ;;  %s969_s21 = smov %s764_s22 }
  0xbe   : > { %p17_p10 = scmp.ge.s32.totalorder %s20_s26, 4   ;;  %s970_s22 = smov %s768_s23 }
  0xbf   : > { %s971_s23 = smov %s871_s10  ;;  %s972_s24 = smov %s776_s25 }
  0xc0   : > { %s973_s25 = smov %s975_s29  ;;  %19 = sbr.rel (!%p17_p10) target bundleno = 4 (0x4), region = 87 }
  0xc5   :  { %530 = vsyncpa [#allocation3], 1 }
  0xc6   :  { %532 = vsyncpa [#allocation3 + $0x1], 1 }

</bundles_post_ra>
